<compile_context>
chip_gen: v6e
topology: v6e:2x2x1
jax: 0.10.0
libtpu: 0.0.40
codegen_flags: <defaults>
</compile_context>

<pallas_src>
import jax
import jax.numpy as jnp
from jax.experimental import pallas as pl
from jax.experimental.pallas import tpu as pltpu

_LANES = 128
_MAX_TILE_ROWS = 512  # lane-dense rows per grid step (~85% of HBM roofline point)


def _round_up(x, m):
    return ((x + m - 1) // m) * m


def _dischange_kernel(x_ref, y_ref, m_ref, out_ref):
    # x_ref / y_ref: (C, T, 128)   m_ref: (T, 128)   out_ref: (8, 128)
    a = jnp.clip((x_ref[...].astype(jnp.float32) + 1.0) * 127.5, 0.0, 255.0)
    b = jnp.clip((y_ref[...].astype(jnp.float32) + 1.0) * 127.5, 0.0, 255.0)
    m = m_ref[...].astype(jnp.float32)

    # Mask reused for all channels via in-register broadcast (never tripled in HBM).
    d = jnp.abs((a - b) * m[None, :, :])               # (C, T, 128)
    c, t, l = d.shape

    # Per-block partial sums kept as one aligned (8, 128) vreg: reduce channels and
    # groups of 8 sublanes with pure vreg+vreg adds (no cross-lane work, no shared
    # accumulator -> grid axis stays "parallel").
    d = jnp.sum(d, axis=0)                              # (T, 128)
    d = jnp.sum(d.reshape(t // 8, 8, l), axis=0)        # (8, 128)
    out_ref[...] = d


def dischange_loss(input_data, makeup_data, mask_src):
    """input_data, makeup_data: (1, C, H, W); mask_src: (1, 1, H, W) (square images,
    as required by the original module's mask expand)."""
    _, c, h, w = input_data.shape
    n_plane = h * w
    n_total = c * n_plane  # global element count of the squeezed (C, H, W) tensors

    rows = -(-n_plane // _LANES)                        # cdiv(n_plane, 128)
    tile_rows = min(_MAX_TILE_ROWS, _round_up(rows, 8))
    padded_rows = _round_up(rows, tile_rows)
    num_tiles = padded_rows // tile_rows
    pad = padded_rows * _LANES - n_plane

    # Lane-dense (rows, 128) planes, native dtype preserved (cast happens in-kernel).
    # Zero padding -> zero contribution (mask pad is 0; x/y pads are identical).
    def to_planes(t, channels):
        t = t.reshape(channels, n_plane)
        if pad:
            t = jnp.pad(t, ((0, 0), (0, pad)))
        return t.reshape(channels, padded_rows, _LANES)

    x = to_planes(input_data, c)
    y = to_planes(makeup_data, c)
    m = to_planes(mask_src, 1)[0]                       # (padded_rows, 128), stored once

    partials = pl.pallas_call(
        _dischange_kernel,
        out_shape=jax.ShapeDtypeStruct((num_tiles * 8, _LANES), jnp.float32),
        grid=(num_tiles,),
        in_specs=[
            pl.BlockSpec((c, tile_rows, _LANES), lambda i: (0, i, 0)),
            pl.BlockSpec((c, tile_rows, _LANES), lambda i: (0, i, 0)),
            pl.BlockSpec((tile_rows, _LANES), lambda i: (i, 0)),
        ],
        out_specs=pl.BlockSpec((8, _LANES), lambda i: (i, 0)),
        compiler_params=pltpu.CompilerParams(
            dimension_semantics=("parallel",)),
    )(x, y, m)

    # Tiny final reduction + mean normalization with the true global count.
    return jnp.sum(partials) * (1.0 / n_total)


if __name__ == "__main__":
    key = jax.random.PRNGKey(0)
    k1, k2, k3 = jax.random.split(key, 3)

    B, C, H, W = 1, 3, 16, 16
    # Images are in [-1, 1] as implied by de_norm.
    input_data = jax.random.uniform(k1, (B, C, H, W), jnp.float32, minval=-1.0, maxval=1.0)
    makeup_data = jax.random.uniform(k2, (B, C, H, W), jnp.float32, minval=-1.0, maxval=1.0)
    # Binary-ish spatial mask.
    mask_src = (jax.random.uniform(k3, (B, 1, H, W), jnp.float32) > 0.5).astype(jnp.float32)

    loss = dischange_loss(input_data, makeup_data, mask_src)
    jax.block_until_ready(loss)

    # Pure-JAX reference matching the original PyTorch forward.
    def ref(xi, yi, mi):
        dn = lambda t: jnp.clip((t + 1.0) * 0.5, 0.0, 1.0) * 255.0
        xs = jnp.squeeze(dn(xi))
        ys = jnp.squeeze(dn(yi))
        ms = jnp.squeeze(jnp.broadcast_to(mi, (1, 3, H, W)))
        return jnp.mean(jnp.abs(xs * ms - ys * ms))

    expected = ref(input_data, makeup_data, mask_src)
    assert jnp.allclose(loss, expected, rtol=1e-5, atol=1e-3), (loss, expected)

    print("KERNEL_OK")
</pallas_src>

<mosaic_0001>
module attributes {stable_mosaic.version = 11 : i64} {
  func.func @_dischange_kernel(%arg0: i32, %arg1: memref<3x8x128xf32, #tpu.memory_space<vmem>>, %arg2: memref<3x8x128xf32, #tpu.memory_space<vmem>>, %arg3: memref<8x128xf32, #tpu.memory_space<vmem>>, %arg4: memref<8x128xf32, #tpu.memory_space<vmem>>) attributes {dimension_semantics = [#tpu.dimension_semantics<parallel>], iteration_bounds = array<i64: 1>, scalar_prefetch = 0 : i64, scratch_operands = 0 : i64, tpu.core_type = #tpu.core_type<tc>, window_params = [{transform_indices = @transform_0, window_bounds = array<i64: 3, 8, 128>}, {transform_indices = @transform_1, window_bounds = array<i64: 3, 8, 128>}, {transform_indices = @transform_2, window_bounds = array<i64: 8, 128>}, {transform_indices = @transform_3, window_bounds = array<i64: 8, 128>}]} {
    %c0 = arith.constant 0 : index
    %c0_0 = arith.constant 0 : index
    %c0_1 = arith.constant 0 : index
    %0 = vector.load %arg1[%c0, %c0_0, %c0_1] : memref<3x8x128xf32, #tpu.memory_space<vmem>>, vector<3x8x128xf32>
    %cst = arith.constant 1.000000e+00 : f32
    %1 = vector.broadcast %cst : f32 to vector<3x8x128xf32>
    %2 = arith.addf %0, %1 : vector<3x8x128xf32>
    %cst_2 = arith.constant 1.275000e+02 : f32
    %3 = vector.broadcast %cst_2 : f32 to vector<3x8x128xf32>
    %4 = arith.mulf %2, %3 : vector<3x8x128xf32>
    %cst_3 = arith.constant 0.000000e+00 : f32
    %cst_4 = arith.constant 2.550000e+02 : f32
    %5 = vector.broadcast %cst_3 : f32 to vector<3x8x128xf32>
    %6 = arith.maximumf %5, %4 : vector<3x8x128xf32>
    %7 = vector.broadcast %cst_4 : f32 to vector<3x8x128xf32>
    %8 = arith.minimumf %7, %6 : vector<3x8x128xf32>
    %c0_5 = arith.constant 0 : index
    %c0_6 = arith.constant 0 : index
    %c0_7 = arith.constant 0 : index
    %9 = vector.load %arg2[%c0_5, %c0_6, %c0_7] : memref<3x8x128xf32, #tpu.memory_space<vmem>>, vector<3x8x128xf32>
    %cst_8 = arith.constant 1.000000e+00 : f32
    %10 = vector.broadcast %cst_8 : f32 to vector<3x8x128xf32>
    %11 = arith.addf %9, %10 : vector<3x8x128xf32>
    %cst_9 = arith.constant 1.275000e+02 : f32
    %12 = vector.broadcast %cst_9 : f32 to vector<3x8x128xf32>
    %13 = arith.mulf %11, %12 : vector<3x8x128xf32>
    %cst_10 = arith.constant 0.000000e+00 : f32
    %cst_11 = arith.constant 2.550000e+02 : f32
    %14 = vector.broadcast %cst_10 : f32 to vector<3x8x128xf32>
    %15 = arith.maximumf %14, %13 : vector<3x8x128xf32>
    %16 = vector.broadcast %cst_11 : f32 to vector<3x8x128xf32>
    %17 = arith.minimumf %16, %15 : vector<3x8x128xf32>
    %c0_12 = arith.constant 0 : index
    %c0_13 = arith.constant 0 : index
    %18 = vector.load %arg3[%c0_12, %c0_13] : memref<8x128xf32, #tpu.memory_space<vmem>>, vector<8x128xf32>
    %19 = arith.subf %8, %17 : vector<3x8x128xf32>
    %20 = vector.shape_cast %18 : vector<8x128xf32> to vector<1x8x128xf32>
    %21 = vector.broadcast %20 : vector<1x8x128xf32> to vector<3x8x128xf32>
    %22 = arith.mulf %19, %21 : vector<3x8x128xf32>
    %23 = math.absf %22 : vector<3x8x128xf32>
    %cst_14 = arith.constant dense<0.000000e+00> : vector<8x128xf32>
    %24 = vector.multi_reduction <add>, %23, %cst_14 [0] : vector<3x8x128xf32> to vector<8x128xf32>
    %25 = vector.shape_cast %24 : vector<8x128xf32> to vector<1x8x128xf32>
    %cst_15 = arith.constant dense<0.000000e+00> : vector<8x128xf32>
    %26 = vector.multi_reduction <add>, %25, %cst_15 [0] : vector<1x8x128xf32> to vector<8x128xf32>
    %c0_16 = arith.constant 0 : index
    %c0_17 = arith.constant 0 : index
    %27 = vector.load %arg4[%c0_16, %c0_17] : memref<8x128xf32, #tpu.memory_space<vmem>>, vector<8x128xf32>
    tpu.vector_store %arg4[%c0_16, %c0_17], %26 {strides = array<i32>} : memref<8x128xf32, #tpu.memory_space<vmem>>, vector<8x128xf32>,
    return
  }
  func.func @transform_0(%arg0: i32) -> (i32, i32, i32) {
    %c0_i32 = arith.constant 0 : i32
    %c0_i32_0 = arith.constant 0 : i32
    %c0_i32_1 = arith.constant 0 : i32
    return %c0_i32, %arg0, %c0_i32_0 : i32, i32, i32
  }
  func.func @transform_1(%arg0: i32) -> (i32, i32, i32) {
    %c0_i32 = arith.constant 0 : i32
    %c0_i32_0 = arith.constant 0 : i32
    %c0_i32_1 = arith.constant 0 : i32
    return %c0_i32, %arg0, %c0_i32_0 : i32, i32, i32
  }
  func.func @transform_2(%arg0: i32) -> (i32, i32) {
    %c0_i32 = arith.constant 0 : i32
    %c0_i32_0 = arith.constant 0 : i32
    return %arg0, %c0_i32 : i32, i32
  }
  func.func @transform_3(%arg0: i32) -> (i32, i32) {
    %c0_i32 = arith.constant 0 : i32
    %c0_i32_0 = arith.constant 0 : i32
    return %arg0, %c0_i32 : i32, i32
  }
}

</mosaic_0001>

<bundles_post_ra>
// kernel: tpu_custom_call.1
= control target key start
LH: loop header
LB: loop body
LE: loop exit
PB: predicated region body
PF: predicated region fallthrough
CT: control target
= control target key end

     0   :  { %8 = vsyncpa [#allocation3], 0  ;;  %s244_s0 = inlined_call_operand.hbm [shape: f32[3,8,128], index: 0, kind: input, shape index: {}]   ;;  %s245_s1 = inlined_call_operand.hbm [shape: f32[3,8,128], index: 1, kind: input, shape index: {}]   ;;  %s246_s2 = inlined_call_operand.hbm [shape: f32[8,128], index: 2, kind: input, shape index: {}]   ;;  %s247_s3 = inlined_call_operand.hbm [shape: f32[8,128], index: 3, kind: output, shape index: {}]  }
   0x1   :  { %9 = vsyncpa [#allocation6], 0 }
   0x2   :  { %10 = vsyncpa [#allocation4], 0  ;;  %s206_s12 = smov [#allocation5]   ;;  %s207_s14 = smov [#allocation2]  }
   0x3   :  { %s28_s13 = sshll.u32 %s206_s12, 4  ;;  %s16_s15 = sshll.u32 %s207_s14, 4  ;;  %s29_s13 = int_to_ptr.vmem [resolvable:$true] %s28_s13  ;;  %s17_s15 = int_to_ptr.vmem [resolvable:$true] %s16_s15 }
   0x4   :  { %s128_s16 = scalar_lea.vmem %s29_s13, 384  ;;  %p133_p1 = scmp.lt.s32.totalorder %s29_s13, %s29_s13 }
   0x5   :  { %p129_p0 = scmp.ne.s32.totalorder %s29_s13, %s128_s16  ;;  %p134_p2 = scmp.lt.s32.totalorder %s128_s16, %s128_s16 }
   0x7   :  { %p135_p3 = por %p134_p2, %p133_p1 }
   0x9   :  { %p136_p4 = pnand %p135_p3, %p129_p0 }
   0xb   :  { %139 = shalt.err (!%p136_p4)
}
   0xc   :  { %s208_s17 = smov 128   ;;  %s209_s18 = smov 8  }
   0xd   :  { %34 = dma.hbm_to_vmem [thread:$0]  %s245_s1, 384, %s29_s13, [#allocation6], %s208_s17, %s208_s17, %s209_s18  }
   0xe   :  { %s148_s21 = scalar_lea.vmem %s17_s15, 384  ;;  %p153_p6 = scmp.lt.s32.totalorder %s17_s15, %s17_s15 }
   0xf   :  { %p149_p5 = scmp.ne.s32.totalorder %s17_s15, %s148_s21  ;;  %p154_p7 = scmp.lt.s32.totalorder %s148_s21, %s148_s21 }
  0x11   :  { %p155_p8 = por %p154_p7, %p153_p6 }
  0x13   :  { %p156_p9 = pnand %p155_p8, %p149_p5 }
  0x15   :  { %159 = shalt.err (!%p156_p9)
}
  0x16   :  { %22 = dma.hbm_to_vmem [thread:$0]  %s244_s0, 384, %s17_s15, [#allocation3], %s208_s17, %s208_s17, %s209_s18  }
  0x17   :  { %s210_s24 = smov [#allocation7]  }
  0x18   :  { %s41_s25 = sshll.u32 %s210_s24, 4  ;;  %s42_s25 = int_to_ptr.vmem [resolvable:$true] %s41_s25 }
  0x19   :  { %s168_s26 = scalar_lea.vmem %s42_s25, 128  ;;  %p173_p11 = scmp.lt.s32.totalorder %s42_s25, %s42_s25 }
  0x1a   :  { %p169_p10 = scmp.ne.s32.totalorder %s42_s25, %s168_s26  ;;  %p174_p12 = scmp.lt.s32.totalorder %s168_s26, %s168_s26 }
  0x1c   :  { %p175_p13 = por %p174_p12, %p173_p11 }
  0x1e   :  { %p176_p0 = pnand %p175_p13, %p169_p10 }
  0x20   :  { %179 = shalt.err (!%p176_p0)
}
  0x21   :  { %44 = dma.hbm_to_vmem [thread:$0]  %s246_s2, 128, %s42_s25, [#allocation6]  }
  0x22   :  { %200 = dma.done.wait [#allocation3], 384  }
  0x23   :  { %201 = vsyncadd [#allocation3], 4294966912 }
  0x24   :  { %202 = dma.done.wait [#allocation6], 512  }
  0x25   :  { %203 = vsyncadd [#allocation6], 4294966784  ;;  %v54_v0 = vld [vmem:[#allocation2] sm:$0xff]  ;;  %v55_v1 = vld [vmem:[#allocation2 + $0x8] sm:$0xff]  ;;  %s211_s0 = smov [#allocation8]  }
  0x26   :  { %v56_v2 = vld [vmem:[#allocation2 + $0x10] sm:$0xff]  ;;  %v57_v3 = vadd.f32 1.0, %v54_v0  ;;  %v58_v4 = vadd.f32 1.0, %v55_v1  ;;  %v69_v6 = vld [vmem:[#allocation5] sm:$0xff]  ;;  %v70_v7 = vld [vmem:[#allocation5 + $0x8] sm:$0xff]  ;;  %s104_s2 = sshll.u32 %s211_s0, 4  ;;  %s105_s2 = int_to_ptr.vmem [resolvable:$true] %s104_s2 }
  0x27   :  { %v59_v5 = vadd.f32 1.0, %v56_v2  ;;  %v71_v8 = vld [vmem:[#allocation5 + $0x10] sm:$0xff]  ;;  %v72_v9 = vadd.f32 1.0, %v69_v6  ;;  %v73_v10 = vadd.f32 1.0, %v70_v7  ;;  %v84_v30 = vld [vmem:[#allocation7] sm:$0xff]  ;;  %s180_s28 = scalar_lea.vmem %s105_s2, 128  ;;  %p185_p2 = scmp.lt.s32.totalorder %s105_s2, %s105_s2 }
  0x28   :  { %v74_v11 = vadd.f32 1.0, %v71_v8  ;;  %v60_v12 = vmul.f32 127.5, %v57_v3  ;;  %v61_v13 = vmul.f32 127.5, %v58_v4  ;;  %p181_p1 = scmp.ne.s32.totalorder %s105_s2, %s180_s28  ;;  %p186_p3 = scmp.lt.s32.totalorder %s180_s28, %s180_s28 }
  0x29   :  { %v62_v14 = vmul.f32 127.5, %v59_v5  ;;  %v75_v15 = vmul.f32 127.5, %v72_v9  ;;  %v76_v16 = vmul.f32 127.5, %v73_v10 }
  0x2a   :  { %v77_v17 = vmul.f32 127.5, %v74_v11  ;;  %v63_v18 = vmax.f32 %v60_v12, 0.0  ;;  %v64_v19 = vmax.f32 %v61_v13, 0.0  ;;  %p187_p4 = por %p186_p3, %p185_p2 }
  0x2b   :  { %v65_v20 = vmax.f32 %v62_v14, 0.0  ;;  %v78_v21 = vmax.f32 %v75_v15, 0.0  ;;  %v79_v22 = vmax.f32 %v76_v16, 0.0 }
  0x2c   :  { %v80_v23 = vmax.f32 %v77_v17, 0.0  ;;  %v66_v24 = vmin.f32 %v63_v18, 255.0  ;;  %v67_v25 = vmin.f32 %v64_v19, 255.0  ;;  %p188_p5 = pnand %p187_p4, %p181_p1 }
  0x2d   :  { %v68_v26 = vmin.f32 %v65_v20, 255.0  ;;  %v81_v27 = vmin.f32 %v78_v21, 255.0  ;;  %v82_v28 = vmin.f32 %v79_v22, 255.0 }
  0x2e   :  { %v83_v29 = vmin.f32 %v80_v23, 255.0 }
  0x2f   :  { %v85_v31 = vsub.f32 %v66_v24, %v81_v27  ;;  %v86_v32 = vsub.f32 %v67_v25, %v82_v28 }
  0x30   :  { %v87_v33 = vsub.f32 %v68_v26, %v83_v29 }
  0x31   :  { %v88_v34 = vmul.f32 %v85_v31, %v84_v30  ;;  %v89_v35 = vmul.f32 %v86_v32, %v84_v30 }
  0x32   :  { %v90_v36 = vmul.f32 %v87_v33, %v84_v30 }
  0x33   :  { %v91_v37 = vand.u32 2147483647, %v88_v34  ;;  %v92_v38 = vand.u32 2147483647, %v89_v35 }
  0x34   :  { %v93_v39 = vand.u32 2147483647, %v90_v36 }
  0x35   :  { %v94_v40 = vadd.f32 %v92_v38, %v91_v37 }
  0x37   :  { %v95_v41 = vadd.f32 %v94_v40, %v93_v39 }
  0x39   :  { %97 = vst [vmem:[#allocation8] sm:$0xff] %v95_v41 }
  0x3a   :  { %191 = shalt.err (!%p188_p5)
}
  0x3b   :  { %107 = dma.vmem_to_hbm [thread:$0]  %s105_s2, 128, %s247_s3, [#allocation4]  }
  0x3c   :  { %204 = dma.done.wait [#allocation4], 128  }
  0x3d   :  { %205 = vsyncadd [#allocation4], 4294967168 }
  0x3e   :  { %111 = vsyncpa [#allocation3], 1 }
  0x3f   :  { %112 = vsyncpa [#allocation6], 1 }
  0x40   :  { %113 = vsyncpa [#allocation4], 1 }

</bundles_post_ra>
